<compile_context>
chip_gen: v7x
topology: tpu7x:2x2x1
jax: 0.10.0
libtpu: 0.0.40
codegen_flags: <defaults>
</compile_context>

<pallas_src>
import functools

import jax
import jax.numpy as jnp
from jax import lax
from jax.experimental import pallas as pl
from jax.experimental.pallas import tpu as pltpu


def _dwconv_kernel(x_ref, w_ref, o_ref, xpad_ref, *, k, stride, pad, Ho, Wo, Hs):
    # x_ref:    (1, C_blk, H, W)    input block (native dtype)
    # w_ref:    (C_blk, k, k)       per-channel filter taps
    # o_ref:    (1, C_blk, Ho, Wo)  output block
    # xpad_ref: (C_blk, Hp, Wp)     VMEM halo scratch (native dtype)
    C_blk, H, W = x_ref.shape[1], x_ref.shape[2], x_ref.shape[3]
    Hp, Wp = xpad_ref.shape[1], xpad_ref.shape[2]

    # --- Fused zero padding: zero ONLY the halo border strips (top/bottom rows,
    # left/right columns); the interior is fully overwritten right below, so a
    # full-scratch zero fill would be a wasted store pass on the scarce vst slot.
    if pad > 0:
        xpad_ref[:, :pad, :] = jnp.zeros((C_blk, pad, Wp), xpad_ref.dtype)
        xpad_ref[:, pad + H:, :] = jnp.zeros((C_blk, Hp - pad - H, Wp), xpad_ref.dtype)
        xpad_ref[:, pad:pad + H, :pad] = jnp.zeros((C_blk, H, pad), xpad_ref.dtype)
        xpad_ref[:, pad:pad + H, pad + W:] = jnp.zeros((C_blk, H, Wp - pad - W),
                                                       xpad_ref.dtype)
    # Interior copy (the only misaligned store; reads below stay aligned because
    # strips start at multiples of Hs*stride sublanes and span all Wp lanes).
    xpad_ref[:, pad:pad + H, pad:pad + W] = x_ref[0]

    # Per-channel taps in f32, once per grid step (tiny: C_blk*k*k).
    w_f32 = w_ref[...].astype(jnp.float32)

    # --- Strip-tiled accumulation over output rows: per strip, one aligned load
    # + one f32 cast of the padded rows, k*k in-register tap slices, one store.
    n_strips = (Ho + Hs - 1) // Hs
    for s in range(n_strips):
        h0 = s * Hs
        hs = min(Hs, Ho - h0)
        row0 = h0 * stride
        in_rows = (hs - 1) * stride + k

        # f32 once per strip (not per tap): fixes bf16-product rounding vs the
        # f32 reference and removes k^2 convert passes on chips w/o bf16 VALU.
        xs = xpad_ref[:, row0:row0 + in_rows, :].astype(jnp.float32)

        acc = jnp.zeros((C_blk, hs, Wo), jnp.float32)
        for kw in range(k):
            # One W-phase (lane) selection per kw: k lane selections per strip.
            if stride == 1:
                xw = xs[:, :, kw:kw + Wo]                          # (C_blk, in_rows, Wo)
            else:
                xw = lax.slice(xs, (0, 0, kw),
                               (C_blk, in_rows, kw + (Wo - 1) * stride + 1),
                               (1, 1, stride))
            for kh in range(k):
                if stride == 1:
                    patch = xw[:, kh:kh + hs, :]                   # (C_blk, hs, Wo)
                else:
                    patch = lax.slice(xw, (0, kh, 0),
                                      (C_blk, kh + (hs - 1) * stride + 1, Wo),
                                      (1, stride, 1))
                wtap = w_f32[:, kh:kh + 1, kw:kw + 1]              # (C_blk, 1, 1)
                acc = acc + patch * wtap

        o_ref[0, :, h0:h0 + hs, :] = acc.astype(o_ref.dtype)


def _pick_c_block(N, C, H, W, Ho, Wo, Hp, Wp, Hs, stride, k, itemsize,
                  budget_bytes, min_grid_steps=4):
    """Largest divisor of C whose per-grid-step VMEM footprint fits the budget,
    while keeping at least `min_grid_steps` grid steps (pipeline + v7x 2 cores).

    Per-channel footprint: double-buffered input block + double-buffered output
    block + (single) halo scratch in the native dtype, plus the f32 strip
    working set (strip value + one tap temporary + accumulator) so spills can't
    push past the scoped limit on v7x (64 MiB physical).
    """
    hs = min(Hs, Ho)
    in_rows = (hs - 1) * stride + k
    per_c = ((2 * H * W + 2 * Ho * Wo + Hp * Wp) * itemsize
             + 4 * (2 * in_rows * Wp + hs * Wo))
    max_c = max(1, budget_bytes // per_c)
    fitting = [d for d in range(1, C + 1) if C % d == 0 and d <= max_c]
    good = [d for d in fitting if N * (C // d) >= min_grid_steps]
    return max(good) if good else max(fitting)


def channelwise_conv(x_nchw, weight_oikk, *, stride=1,
                     vmem_budget_bytes=24 << 20,
                     vmem_limit_bytes=32 << 20,
                     row_strip=8):
    """Depthwise conv matching nn.Conv2d(nIn, nIn, k, stride, pad=(k-1)//2, groups=nIn, bias=False).

    Args:
      x_nchw: (N, C, H, W)
      weight_oikk: (C, 1, k, k)  (PyTorch depthwise weight layout)
      stride: conv stride.
      vmem_budget_bytes: per-step block-sizing budget (~25% below vmem_limit_bytes).
      vmem_limit_bytes: explicit scoped-VMEM limit handed to Mosaic.
      row_strip: output-row strip height for in-register accumulation.
    Returns:
      (N, C, Ho, Wo)
    """
    N, C, H, W = x_nchw.shape
    k = int(weight_oikk.shape[-1])
    pad = (k - 1) // 2
    Ho = (H + 2 * pad - k) // stride + 1
    Wo = (W + 2 * pad - k) // stride + 1
    Hp, Wp = H + 2 * pad, W + 2 * pad

    # (C, 1, k, k) -> (C, k, k): tiny reshape, no HBM pass over the feature map.
    w_ckk = weight_oikk.reshape(C, k, k)

    itemsize = jnp.dtype(x_nchw.dtype).itemsize
    Hs = max(1, min(int(row_strip), Ho))
    C_blk = _pick_c_block(N, C, H, W, Ho, Wo, Hp, Wp, Hs, stride, k,
                          itemsize, vmem_budget_bytes)

    kernel = functools.partial(_dwconv_kernel, k=k, stride=stride, pad=pad,
                               Ho=Ho, Wo=Wo, Hs=Hs)

    out = pl.pallas_call(
        kernel,
        out_shape=jax.ShapeDtypeStruct((N, C, Ho, Wo), x_nchw.dtype),
        grid_spec=pltpu.PrefetchScalarGridSpec(
            num_scalar_prefetch=0,
            grid=(N, C // C_blk),
            in_specs=[
                pl.BlockSpec((1, C_blk, H, W), lambda n, c: (n, c, 0, 0)),
                pl.BlockSpec((C_blk, k, k), lambda n, c: (c, 0, 0)),
            ],
            out_specs=pl.BlockSpec((1, C_blk, Ho, Wo), lambda n, c: (n, c, 0, 0)),
            scratch_shapes=[pltpu.VMEM((C_blk, Hp, Wp), x_nchw.dtype)],
        ),
        compiler_params=pltpu.CompilerParams(
            dimension_semantics=("parallel", "parallel"),
            vmem_limit_bytes=vmem_limit_bytes,
        ),
    )(x_nchw, w_ckk)
    return out


def _reference(x_nchw, weight_oikk, *, stride=1):
    """Pure-JAX reference using lax.conv_general_dilated (matches PyTorch Conv2d)."""
    C = x_nchw.shape[1]
    k = weight_oikk.shape[-1]
    pad = (k - 1) // 2
    return lax.conv_general_dilated(
        x_nchw.astype(jnp.float32),
        weight_oikk.astype(jnp.float32),
        window_strides=(stride, stride),
        padding=((pad, pad), (pad, pad)),
        dimension_numbers=("NCHW", "OIHW", "NCHW"),
        feature_group_count=C,
    ).astype(x_nchw.dtype)


if __name__ == "__main__":
    # Small deterministic example: nIn = nOut = 4, kSize = 3, stride = 1.
    N, C, H, W = 2, 4, 16, 16
    k, stride = 3, 1

    key = jax.random.PRNGKey(0)
    kx, kw_ = jax.random.split(key)
    x = jax.random.normal(kx, (N, C, H, W), dtype=jnp.float32)
    # PyTorch depthwise weight shape: (nOut, nIn/groups=1, k, k)
    weight = jax.random.normal(kw_, (C, 1, k, k), dtype=jnp.float32) * 0.1

    out = channelwise_conv(x, weight, stride=stride)
    out = jax.block_until_ready(out)

    ref = _reference(x, weight, stride=stride)
    assert out.shape == ref.shape, (out.shape, ref.shape)
    assert jnp.allclose(out, ref, atol=1e-5, rtol=1e-5), "mismatch vs reference conv"

    print("KERNEL_OK")
</pallas_src>

<mosaic_0001>
module attributes {stable_mosaic.version = 11 : i64} {
  func.func @_dwconv_kernel(%arg0: i32, %arg1: i32, %arg2: memref<1x2x16x16xf32, #tpu.memory_space<vmem>>, %arg3: memref<2x3x3xf32, #tpu.memory_space<vmem>>, %arg4: memref<1x2x16x16xf32, #tpu.memory_space<vmem>>, %arg5: memref<2x18x18xf32, #tpu.memory_space<vmem>>) attributes {dimension_semantics = [#tpu.dimension_semantics<parallel>, #tpu.dimension_semantics<parallel>], iteration_bounds = array<i64: 2, 2>, scalar_prefetch = 0 : i64, scratch_operands = 1 : i64, tpu.core_type = #tpu.core_type<tc>, window_params = [{transform_indices = @transform_0, window_bounds = array<i64: 1, 2, 16, 16>}, {transform_indices = @transform_1, window_bounds = array<i64: 2, 3, 3>}, {transform_indices = @transform_2, window_bounds = array<i64: 1, 2, 16, 16>}]} {
    %cst = arith.constant 0.000000e+00 : f32
    %0 = vector.broadcast %cst : f32 to vector<2x1x18xf32>
    %c0 = arith.constant 0 : index
    %c0_0 = arith.constant 0 : index
    %c0_1 = arith.constant 0 : index
    %1 = vector.load %arg5[%c0, %c0_0, %c0_1] : memref<2x18x18xf32, #tpu.memory_space<vmem>>, vector<2x1x18xf32>
    tpu.vector_store %arg5[%c0, %c0_0, %c0_1], %0 {strides = array<i32>} : memref<2x18x18xf32, #tpu.memory_space<vmem>>, vector<2x1x18xf32>,
    %cst_2 = arith.constant 0.000000e+00 : f32
    %2 = vector.broadcast %cst_2 : f32 to vector<2x1x18xf32>
    %c0_3 = arith.constant 0 : index
    %c17 = arith.constant 17 : index
    %c0_4 = arith.constant 0 : index
    %3 = vector.load %arg5[%c0_3, %c17, %c0_4] : memref<2x18x18xf32, #tpu.memory_space<vmem>>, vector<2x1x18xf32>
    tpu.vector_store %arg5[%c0_3, %c17, %c0_4], %2 {strides = array<i32>} : memref<2x18x18xf32, #tpu.memory_space<vmem>>, vector<2x1x18xf32>,
    %cst_5 = arith.constant 0.000000e+00 : f32
    %4 = vector.broadcast %cst_5 : f32 to vector<2x16x1xf32>
    %c0_6 = arith.constant 0 : index
    %c1 = arith.constant 1 : index
    %c0_7 = arith.constant 0 : index
    %5 = vector.load %arg5[%c0_6, %c1, %c0_7] : memref<2x18x18xf32, #tpu.memory_space<vmem>>, vector<2x16x1xf32>
    tpu.vector_store %arg5[%c0_6, %c1, %c0_7], %4 {strides = array<i32>} : memref<2x18x18xf32, #tpu.memory_space<vmem>>, vector<2x16x1xf32>,
    %cst_8 = arith.constant 0.000000e+00 : f32
    %6 = vector.broadcast %cst_8 : f32 to vector<2x16x1xf32>
    %c0_9 = arith.constant 0 : index
    %c1_10 = arith.constant 1 : index
    %c17_11 = arith.constant 17 : index
    %7 = vector.load %arg5[%c0_9, %c1_10, %c17_11] : memref<2x18x18xf32, #tpu.memory_space<vmem>>, vector<2x16x1xf32>
    tpu.vector_store %arg5[%c0_9, %c1_10, %c17_11], %6 {strides = array<i32>} : memref<2x18x18xf32, #tpu.memory_space<vmem>>, vector<2x16x1xf32>,
    %c0_12 = arith.constant 0 : index
    %c0_13 = arith.constant 0 : index
    %c0_14 = arith.constant 0 : index
    %c0_15 = arith.constant 0 : index
    %8 = vector.load %arg2[%c0_12, %c0_13, %c0_14, %c0_15] : memref<1x2x16x16xf32, #tpu.memory_space<vmem>>, vector<1x2x16x16xf32>
    %9 = vector.shape_cast %8 : vector<1x2x16x16xf32> to vector<2x16x16xf32>
    %c0_16 = arith.constant 0 : index
    %c1_17 = arith.constant 1 : index
    %c1_18 = arith.constant 1 : index
    %10 = vector.load %arg5[%c0_16, %c1_17, %c1_18] : memref<2x18x18xf32, #tpu.memory_space<vmem>>, vector<2x16x16xf32>
    tpu.vector_store %arg5[%c0_16, %c1_17, %c1_18], %9 {strides = array<i32>} : memref<2x18x18xf32, #tpu.memory_space<vmem>>, vector<2x16x16xf32>,
    %c0_19 = arith.constant 0 : index
    %c0_20 = arith.constant 0 : index
    %c0_21 = arith.constant 0 : index
    %11 = vector.load %arg3[%c0_19, %c0_20, %c0_21] : memref<2x3x3xf32, #tpu.memory_space<vmem>>, vector<2x3x3xf32>
    %c0_22 = arith.constant 0 : index
    %c0_23 = arith.constant 0 : index
    %c0_24 = arith.constant 0 : index
    %12 = vector.load %arg5[%c0_22, %c0_23, %c0_24] : memref<2x18x18xf32, #tpu.memory_space<vmem>>, vector<2x10x18xf32>
    %cst_25 = arith.constant 0.000000e+00 : f32
    %13 = vector.broadcast %cst_25 : f32 to vector<2x8x16xf32>
    %14 = vector.extract_strided_slice %12 {offsets = [0, 0, 0], sizes = [2, 10, 16], strides = [1, 1, 1]} : vector<2x10x18xf32> to vector<2x10x16xf32>
    %15 = vector.extract_strided_slice %14 {offsets = [0, 0, 0], sizes = [2, 8, 16], strides = [1, 1, 1]} : vector<2x10x16xf32> to vector<2x8x16xf32>
    %16 = vector.extract_strided_slice %11 {offsets = [0, 0, 0], sizes = [2, 1, 1], strides = [1, 1, 1]} : vector<2x3x3xf32> to vector<2x1x1xf32>
    %17 = vector.broadcast %16 : vector<2x1x1xf32> to vector<2x8x16xf32>
    %18 = arith.mulf %15, %17 : vector<2x8x16xf32>
    %19 = arith.addf %13, %18 : vector<2x8x16xf32>
    %20 = vector.extract_strided_slice %14 {offsets = [0, 1, 0], sizes = [2, 8, 16], strides = [1, 1, 1]} : vector<2x10x16xf32> to vector<2x8x16xf32>
    %21 = vector.extract_strided_slice %11 {offsets = [0, 1, 0], sizes = [2, 1, 1], strides = [1, 1, 1]} : vector<2x3x3xf32> to vector<2x1x1xf32>
    %22 = vector.broadcast %21 : vector<2x1x1xf32> to vector<2x8x16xf32>
    %23 = arith.mulf %20, %22 : vector<2x8x16xf32>
    %24 = arith.addf %19, %23 : vector<2x8x16xf32>
    %25 = vector.extract_strided_slice %14 {offsets = [0, 2, 0], sizes = [2, 8, 16], strides = [1, 1, 1]} : vector<2x10x16xf32> to vector<2x8x16xf32>
    %26 = vector.extract_strided_slice %11 {offsets = [0, 2, 0], sizes = [2, 1, 1], strides = [1, 1, 1]} : vector<2x3x3xf32> to vector<2x1x1xf32>
    %27 = vector.broadcast %26 : vector<2x1x1xf32> to vector<2x8x16xf32>
    %28 = arith.mulf %25, %27 : vector<2x8x16xf32>
    %29 = arith.addf %24, %28 : vector<2x8x16xf32>
    %30 = vector.extract_strided_slice %12 {offsets = [0, 0, 1], sizes = [2, 10, 16], strides = [1, 1, 1]} : vector<2x10x18xf32> to vector<2x10x16xf32>
    %31 = vector.extract_strided_slice %30 {offsets = [0, 0, 0], sizes = [2, 8, 16], strides = [1, 1, 1]} : vector<2x10x16xf32> to vector<2x8x16xf32>
    %32 = vector.extract_strided_slice %11 {offsets = [0, 0, 1], sizes = [2, 1, 1], strides = [1, 1, 1]} : vector<2x3x3xf32> to vector<2x1x1xf32>
    %33 = vector.broadcast %32 : vector<2x1x1xf32> to vector<2x8x16xf32>
    %34 = arith.mulf %31, %33 : vector<2x8x16xf32>
    %35 = arith.addf %29, %34 : vector<2x8x16xf32>
    %36 = vector.extract_strided_slice %30 {offsets = [0, 1, 0], sizes = [2, 8, 16], strides = [1, 1, 1]} : vector<2x10x16xf32> to vector<2x8x16xf32>
    %37 = vector.extract_strided_slice %11 {offsets = [0, 1, 1], sizes = [2, 1, 1], strides = [1, 1, 1]} : vector<2x3x3xf32> to vector<2x1x1xf32>
    %38 = vector.broadcast %37 : vector<2x1x1xf32> to vector<2x8x16xf32>
    %39 = arith.mulf %36, %38 : vector<2x8x16xf32>
    %40 = arith.addf %35, %39 : vector<2x8x16xf32>
    %41 = vector.extract_strided_slice %30 {offsets = [0, 2, 0], sizes = [2, 8, 16], strides = [1, 1, 1]} : vector<2x10x16xf32> to vector<2x8x16xf32>
    %42 = vector.extract_strided_slice %11 {offsets = [0, 2, 1], sizes = [2, 1, 1], strides = [1, 1, 1]} : vector<2x3x3xf32> to vector<2x1x1xf32>
    %43 = vector.broadcast %42 : vector<2x1x1xf32> to vector<2x8x16xf32>
    %44 = arith.mulf %41, %43 : vector<2x8x16xf32>
    %45 = arith.addf %40, %44 : vector<2x8x16xf32>
    %46 = vector.extract_strided_slice %12 {offsets = [0, 0, 2], sizes = [2, 10, 16], strides = [1, 1, 1]} : vector<2x10x18xf32> to vector<2x10x16xf32>
    %47 = vector.extract_strided_slice %46 {offsets = [0, 0, 0], sizes = [2, 8, 16], strides = [1, 1, 1]} : vector<2x10x16xf32> to vector<2x8x16xf32>
    %48 = vector.extract_strided_slice %11 {offsets = [0, 0, 2], sizes = [2, 1, 1], strides = [1, 1, 1]} : vector<2x3x3xf32> to vector<2x1x1xf32>
    %49 = vector.broadcast %48 : vector<2x1x1xf32> to vector<2x8x16xf32>
    %50 = arith.mulf %47, %49 : vector<2x8x16xf32>
    %51 = arith.addf %45, %50 : vector<2x8x16xf32>
    %52 = vector.extract_strided_slice %46 {offsets = [0, 1, 0], sizes = [2, 8, 16], strides = [1, 1, 1]} : vector<2x10x16xf32> to vector<2x8x16xf32>
    %53 = vector.extract_strided_slice %11 {offsets = [0, 1, 2], sizes = [2, 1, 1], strides = [1, 1, 1]} : vector<2x3x3xf32> to vector<2x1x1xf32>
    %54 = vector.broadcast %53 : vector<2x1x1xf32> to vector<2x8x16xf32>
    %55 = arith.mulf %52, %54 : vector<2x8x16xf32>
    %56 = arith.addf %51, %55 : vector<2x8x16xf32>
    %57 = vector.extract_strided_slice %46 {offsets = [0, 2, 0], sizes = [2, 8, 16], strides = [1, 1, 1]} : vector<2x10x16xf32> to vector<2x8x16xf32>
    %58 = vector.extract_strided_slice %11 {offsets = [0, 2, 2], sizes = [2, 1, 1], strides = [1, 1, 1]} : vector<2x3x3xf32> to vector<2x1x1xf32>
    %59 = vector.broadcast %58 : vector<2x1x1xf32> to vector<2x8x16xf32>
    %60 = arith.mulf %57, %59 : vector<2x8x16xf32>
    %61 = arith.addf %56, %60 : vector<2x8x16xf32>
    %c0_26 = arith.constant 0 : index
    %c0_27 = arith.constant 0 : index
    %c0_28 = arith.constant 0 : index
    %c0_29 = arith.constant 0 : index
    %62 = vector.load %arg4[%c0_26, %c0_27, %c0_28, %c0_29] : memref<1x2x16x16xf32, #tpu.memory_space<vmem>>, vector<1x2x8x16xf32>
    %63 = vector.shape_cast %62 : vector<1x2x8x16xf32> to vector<2x8x16xf32>
    %64 = vector.shape_cast %61 : vector<2x8x16xf32> to vector<1x2x8x16xf32>
    tpu.vector_store %arg4[%c0_26, %c0_27, %c0_28, %c0_29], %64 {strides = array<i32>} : memref<1x2x16x16xf32, #tpu.memory_space<vmem>>, vector<1x2x8x16xf32>,
    %c0_30 = arith.constant 0 : index
    %c8 = arith.constant 8 : index
    %c0_31 = arith.constant 0 : index
    %65 = vector.load %arg5[%c0_30, %c8, %c0_31] : memref<2x18x18xf32, #tpu.memory_space<vmem>>, vector<2x10x18xf32>
    %cst_32 = arith.constant 0.000000e+00 : f32
    %66 = vector.broadcast %cst_32 : f32 to vector<2x8x16xf32>
    %67 = vector.extract_strided_slice %65 {offsets = [0, 0, 0], sizes = [2, 10, 16], strides = [1, 1, 1]} : vector<2x10x18xf32> to vector<2x10x16xf32>
    %68 = vector.extract_strided_slice %67 {offsets = [0, 0, 0], sizes = [2, 8, 16], strides = [1, 1, 1]} : vector<2x10x16xf32> to vector<2x8x16xf32>
    %69 = vector.extract_strided_slice %11 {offsets = [0, 0, 0], sizes = [2, 1, 1], strides = [1, 1, 1]} : vector<2x3x3xf32> to vector<2x1x1xf32>
    %70 = vector.broadcast %69 : vector<2x1x1xf32> to vector<2x8x16xf32>
    %71 = arith.mulf %68, %70 : vector<2x8x16xf32>
    %72 = arith.addf %66, %71 : vector<2x8x16xf32>
    %73 = vector.extract_strided_slice %67 {offsets = [0, 1, 0], sizes = [2, 8, 16], strides = [1, 1, 1]} : vector<2x10x16xf32> to vector<2x8x16xf32>
    %74 = vector.extract_strided_slice %11 {offsets = [0, 1, 0], sizes = [2, 1, 1], strides = [1, 1, 1]} : vector<2x3x3xf32> to vector<2x1x1xf32>
    %75 = vector.broadcast %74 : vector<2x1x1xf32> to vector<2x8x16xf32>
    %76 = arith.mulf %73, %75 : vector<2x8x16xf32>
    %77 = arith.addf %72, %76 : vector<2x8x16xf32>
    %78 = vector.extract_strided_slice %67 {offsets = [0, 2, 0], sizes = [2, 8, 16], strides = [1, 1, 1]} : vector<2x10x16xf32> to vector<2x8x16xf32>
    %79 = vector.extract_strided_slice %11 {offsets = [0, 2, 0], sizes = [2, 1, 1], strides = [1, 1, 1]} : vector<2x3x3xf32> to vector<2x1x1xf32>
    %80 = vector.broadcast %79 : vector<2x1x1xf32> to vector<2x8x16xf32>
    %81 = arith.mulf %78, %80 : vector<2x8x16xf32>
    %82 = arith.addf %77, %81 : vector<2x8x16xf32>
    %83 = vector.extract_strided_slice %65 {offsets = [0, 0, 1], sizes = [2, 10, 16], strides = [1, 1, 1]} : vector<2x10x18xf32> to vector<2x10x16xf32>
    %84 = vector.extract_strided_slice %83 {offsets = [0, 0, 0], sizes = [2, 8, 16], strides = [1, 1, 1]} : vector<2x10x16xf32> to vector<2x8x16xf32>
    %85 = vector.extract_strided_slice %11 {offsets = [0, 0, 1], sizes = [2, 1, 1], strides = [1, 1, 1]} : vector<2x3x3xf32> to vector<2x1x1xf32>
    %86 = vector.broadcast %85 : vector<2x1x1xf32> to vector<2x8x16xf32>
    %87 = arith.mulf %84, %86 : vector<2x8x16xf32>
    %88 = arith.addf %82, %87 : vector<2x8x16xf32>
    %89 = vector.extract_strided_slice %83 {offsets = [0, 1, 0], sizes = [2, 8, 16], strides = [1, 1, 1]} : vector<2x10x16xf32> to vector<2x8x16xf32>
    %90 = vector.extract_strided_slice %11 {offsets = [0, 1, 1], sizes = [2, 1, 1], strides = [1, 1, 1]} : vector<2x3x3xf32> to vector<2x1x1xf32>
    %91 = vector.broadcast %90 : vector<2x1x1xf32> to vector<2x8x16xf32>
    %92 = arith.mulf %89, %91 : vector<2x8x16xf32>
    %93 = arith.addf %88, %92 : vector<2x8x16xf32>
    %94 = vector.extract_strided_slice %83 {offsets = [0, 2, 0], sizes = [2, 8, 16], strides = [1, 1, 1]} : vector<2x10x16xf32> to vector<2x8x16xf32>
    %95 = vector.extract_strided_slice %11 {offsets = [0, 2, 1], sizes = [2, 1, 1], strides = [1, 1, 1]} : vector<2x3x3xf32> to vector<2x1x1xf32>
    %96 = vector.broadcast %95 : vector<2x1x1xf32> to vector<2x8x16xf32>
    %97 = arith.mulf %94, %96 : vector<2x8x16xf32>
    %98 = arith.addf %93, %97 : vector<2x8x16xf32>
    %99 = vector.extract_strided_slice %65 {offsets = [0, 0, 2], sizes = [2, 10, 16], strides = [1, 1, 1]} : vector<2x10x18xf32> to vector<2x10x16xf32>
    %100 = vector.extract_strided_slice %99 {offsets = [0, 0, 0], sizes = [2, 8, 16], strides = [1, 1, 1]} : vector<2x10x16xf32> to vector<2x8x16xf32>
    %101 = vector.extract_strided_slice %11 {offsets = [0, 0, 2], sizes = [2, 1, 1], strides = [1, 1, 1]} : vector<2x3x3xf32> to vector<2x1x1xf32>
    %102 = vector.broadcast %101 : vector<2x1x1xf32> to vector<2x8x16xf32>
    %103 = arith.mulf %100, %102 : vector<2x8x16xf32>
    %104 = arith.addf %98, %103 : vector<2x8x16xf32>
    %105 = vector.extract_strided_slice %99 {offsets = [0, 1, 0], sizes = [2, 8, 16], strides = [1, 1, 1]} : vector<2x10x16xf32> to vector<2x8x16xf32>
    %106 = vector.extract_strided_slice %11 {offsets = [0, 1, 2], sizes = [2, 1, 1], strides = [1, 1, 1]} : vector<2x3x3xf32> to vector<2x1x1xf32>
    %107 = vector.broadcast %106 : vector<2x1x1xf32> to vector<2x8x16xf32>
    %108 = arith.mulf %105, %107 : vector<2x8x16xf32>
    %109 = arith.addf %104, %108 : vector<2x8x16xf32>
    %110 = vector.extract_strided_slice %99 {offsets = [0, 2, 0], sizes = [2, 8, 16], strides = [1, 1, 1]} : vector<2x10x16xf32> to vector<2x8x16xf32>
    %111 = vector.extract_strided_slice %11 {offsets = [0, 2, 2], sizes = [2, 1, 1], strides = [1, 1, 1]} : vector<2x3x3xf32> to vector<2x1x1xf32>
    %112 = vector.broadcast %111 : vector<2x1x1xf32> to vector<2x8x16xf32>
    %113 = arith.mulf %110, %112 : vector<2x8x16xf32>
    %114 = arith.addf %109, %113 : vector<2x8x16xf32>
    %c0_33 = arith.constant 0 : index
    %c0_34 = arith.constant 0 : index
    %c8_35 = arith.constant 8 : index
    %c0_36 = arith.constant 0 : index
    %115 = vector.load %arg4[%c0_33, %c0_34, %c8_35, %c0_36] : memref<1x2x16x16xf32, #tpu.memory_space<vmem>>, vector<1x2x8x16xf32>
    %116 = vector.shape_cast %115 : vector<1x2x8x16xf32> to vector<2x8x16xf32>
    %117 = vector.shape_cast %114 : vector<2x8x16xf32> to vector<1x2x8x16xf32>
    tpu.vector_store %arg4[%c0_33, %c0_34, %c8_35, %c0_36], %117 {strides = array<i32>} : memref<1x2x16x16xf32, #tpu.memory_space<vmem>>, vector<1x2x8x16xf32>,
    return
  }
  func.func @transform_0(%arg0: i32, %arg1: i32) -> (i32, i32, i32, i32) {
    %c0_i32 = arith.constant 0 : i32
    %c0_i32_0 = arith.constant 0 : i32
    %c0_i32_1 = arith.constant 0 : i32
    return %arg0, %arg1, %c0_i32, %c0_i32_0 : i32, i32, i32, i32
  }
  func.func @transform_1(%arg0: i32, %arg1: i32) -> (i32, i32, i32) {
    %c0_i32 = arith.constant 0 : i32
    %c0_i32_0 = arith.constant 0 : i32
    %c0_i32_1 = arith.constant 0 : i32
    return %arg1, %c0_i32, %c0_i32_0 : i32, i32, i32
  }
  func.func @transform_2(%arg0: i32, %arg1: i32) -> (i32, i32, i32, i32) {
    %c0_i32 = arith.constant 0 : i32
    %c0_i32_0 = arith.constant 0 : i32
    %c0_i32_1 = arith.constant 0 : i32
    return %arg0, %arg1, %c0_i32, %c0_i32_0 : i32, i32, i32, i32
  }
}

</mosaic_0001>

<bundles_post_ra>
// kernel: tpu_custom_call.1
= control target key start
LH: loop header
LB: loop body
LE: loop exit
PB: predicated region body
PF: predicated region fallthrough
CT: control target
= control target key end

     0   :  { %7 = vsyncpa [#allocation4], 0  ;;  %s1436_s0 = inlined_call_operand.hbm [shape: f32[2,4,16,16], index: 0, kind: input, shape index: {}]   ;;  %s1437_s1 = inlined_call_operand.vmem [shape: f32[4,3,3], index: 1, kind: input, shape index: {}]   ;;  %s1438_s2 = inlined_call_operand.hbm [shape: f32[2,4,16,16], index: 2, kind: output, shape index: {}]  }
   0x1   :  { %9 = vsyncpa [#allocation4 + $0x1], 0 }
   0x2   :  { %10 = vsyncpa [#allocation5], 0 }
   0x3   :  { %12 = vsyncpa [#allocation5 + $0x1], 0  ;;  %s1069_s9 = smov 0   ;;  %s1071_s10 = smov 0  }
   0x4   :  { %s1073_s11 = smov 0   ;;  %s1075_s12 = smov 0  }
   0x5   :  { %s1077_s13 = smov 0   ;;  %s1079_s14 = smov 0  }
   0x6   :  { %s1081_s15 = smov 0   ;;  %s1083_s16 = smov 0  }
   0x7 LB: > { %s769_s17 = sadd.s32 4294967295, %s1042_s16   ;;  %s770_s18 = sadd.s32 4294967294, %s1042_s16   ;;  %s1042_s16 = sphi %s1083_s16, %s18_s16   ;;  %s1038_s15 = sphi %s1081_s15, %s1453_s15   ;;  %s1034_s14 = sphi %s1079_s14, %s1452_s14   ;;  %s1030_s13 = sphi %s1077_s13, %s1451_s13   ;;  %s1026_s12 = sphi %s1075_s12, %s1450_s12   ;;  %s1022_s11 = sphi %s1073_s11, %s1449_s11   ;;  %s1018_s10 = sphi %s1071_s10, %s1448_s10   ;;  %s1014_s9 = sphi %s1069_s9, %s1447_s9  }
   0x8   : > { %s27_s19 = sadd.s32 1, %s1034_s14  ;;  %s30_s20 = sadd.s32 1, %s1038_s15 }
   0x9   : > { %p28_p0 = scmp.ge.s32.totalorder %s27_s19, 2  ;;  %s39_s21 = sadd.s32 1, %s1022_s11 }
   0xa   : > { %p46_p1 = scmp.ne.s32.totalorder %s1022_s11, %s1018_s10  ;;  %p47_p2 = scmp.eq.s32.totalorder %s1042_s16, 0 }
   0xb   : > { %s1455_s19 = smov (%p28_p0, %s27_s19), 0  ;;  %s1457_s20 = smov (!%p28_p0, %s30_s20), %s1038_s15 }
   0xc   : > { %s35_s22 = ssub.s32 %s1034_s14, %s1455_s19  ;;  %p1122_p3 = por %p47_p2, %p46_p1 }
   0xd   : > { %p32_p4 = scmp.ge.s32.totalorder %s1457_s20, 2  ;;  %p52_p5 = scmp.ne.s32.totalorder %s1018_s10, %s1014_s9 }
   0xe   : > { %p53_p6 = scmp.eq.s32.totalorder %s769_s17, 0  ;;  %p104_p7 = scmp.eq.s32.totalorder %s769_s17, 3 }
   0xf   : > { %s1459_s20 = smov (%p32_p4, %s1457_s20), 0  ;;  %p110_p10 = scmp.eq.s32.totalorder %s770_s18, 3 }
  0x10   : > { %p1130_p8 = por %p53_p6, %p52_p5  ;;  %p1134_p9 = por %p104_p7, %p46_p1 }
  0x11   : > { %s34_s26 = ssub.s32 %s1038_s15, %s1459_s20  ;;  %p1140_p12 = por %p110_p10, %p52_p5 }
  0x12   : > { %s1442_s25 = scalar_select %p1134_p9, 1, 0 }
  0x13   : > { %s36_s27 = sor.u32 %s35_s22, %s34_s26  ;;  %p840_p13 = scmp.lt.s32.totalorder %s1042_s16, 4 }
  0x14   : > { %p37_p11 = scmp.eq.s32.totalorder %s36_s27, 0  ;;  %s130_s29 = sand.u32 1, %s1022_s11  }
  0x15   : > { %s1443_s28 = scalar_select %p1140_p12, 1, 0 }
  0x16   : > { %s1147_s30 = scalar_select %p37_p11, %s1022_s11, %s39_s21  }
  0x17   : > { %s773_s3 = sshll.u32 %s130_s29, 5  ;;  %s790_s4 = sshll.u32 %s1034_s14, 2 }
  0x18   : > { %s776_s5 = sshll.u32 %s1038_s15, 3  ;;  %s134_s6 = scalar_lea.vmem [#allocation3], %s773_s3 }
  0x19   : > { %s144_s7 = sshll.u32 %s134_s6, 4  ;;  %s141_s8 = sadd.s32 %s790_s4, %s776_s5  ;;  %s1151_s7 = int_to_ptr.vmem [resolvable:$true] %s144_s7 }
  0x1a   : > { %s777_s17 = sshll.u32 %s141_s8, 7  ;;  %p1155_p0 = pnand %p840_p13, %p1122_p3 }
  0x1b   : > { %s1162_s21 = scalar_lea.hbm %s1436_s0, %s777_s17  ;;  %s1164_s27 = scalar_lea.sflag [#allocation4], %s130_s29 }
  0x1c   : > { %s914_s3 = scalar_lea.hbm %s1162_s21, 512  ;;  %p916_p2 = pneg %p1155_p0 }
  0x1d   : > { %p915_p1 = scmp.ne.s32.totalorder %s1162_s21, %s914_s3  ;;  %s919_s5 = scalar_lea.hbm %s1436_s0, 2048 }
  0x1e   : > { %p920_p5 = scmp.lt.u32.totalorder %s1162_s21, %s1436_s0  ;;  %p921_p6 = scmp.lt.u32.totalorder %s919_s5, %s914_s3 }
  0x1f   : > { %p917_p3 = pnand %p916_p2, %p915_p1  ;;  %p923_p10 = scmp.lt.u32.totalorder %s914_s3, %s1162_s21 }
  0x20   : > { %p922_p7 = por %p921_p6, %p920_p5 }
  0x21   : > { %p918_p4 = pneg %p917_p3 }
  0x22   : > { %p924_p11 = por %p923_p10, %p922_p7 }
  0x24   : > { %p925_p13 = pnand %p924_p11, %p918_p4 }
  0x26   : > { %928 = shalt.err (!%p925_p13)
}
  0x27   : > { %s929_s29 = scalar_lea.vmem %s1151_s7, 512  ;;  %s1044_s17 = smov [#allocation3]  }
  0x28   : > { %p930_p1 = scmp.ne.s32.totalorder %s1151_s7, %s929_s29  ;;  %s934_s22 = sshll.u32 %s1044_s17, 4  ;;  %s935_s22 = int_to_ptr.vmem [resolvable:$false] %s934_s22 }
  0x29   : > { %s936_s26 = scalar_lea.vmem %s935_s22, 1024  ;;  %p937_p9 = scmp.lt.s32.totalorder %s1151_s7, %s935_s22 }
  0x2a   : > { %p932_p3 = pnand %p930_p1, %p916_p2  ;;  %p938_p5 = scmp.lt.s32.totalorder %s936_s26, %s929_s29 }
  0x2c   : > { %p933_p12 = pneg %p932_p3  ;;  %p939_p6 = por %p938_p5, %p937_p9 }
  0x2e   : > { %p940_p7 = pnand %p939_p6, %p933_p12 }
  0x30   : > { %943 = shalt.err (!%p940_p7)
}
  0x31   : > { %s1045_s3 = smov 128   ;;  %s1046_s23 = smov 8  }
  0x32   : > { %835 = dma.hbm_to_vmem [thread:$0]  (!%p1155_p0), %s1162_s21, 512, %s1151_s7, %s1164_s27, %s1045_s3, %s1045_s3, %s1046_s23  }
  0x33   : > { %p778_p2 = scmp.ge.s32.totalorder %s1042_s16, 1  ;;  %p161_p4 = scmp.lt.s32.totalorder %s1042_s16, 5 }
  0x35   : > { %p162_p10 = pnand %p778_p2, %p161_p4 }
  0x36   : > { %s1195_s4 = sand.u32 (!%p162_p10), 1, %s1018_s10  }
  0x37   : > { %165 = sbr.rel (%p162_p10) target bundleno = 420 (0x1a4), region = 28  ;;  %s779_s5 = sshll.u32 (!%p162_p10), %s1195_s4, 5 }
  0x38   : > { %s168_s6 = scalar_lea.sflag (!%p162_p10), [#allocation4], %s1195_s4  ;;  %s1201_s8 = scalar_lea.vmem (!%p162_p10), [#allocation3], %s779_s5 }
  0x3e   : > { %1005 = dma.done.wait (%p1130_p8), %s168_s6, 512  }
  0x3f   : > { %1007 = vsyncadd (%p1130_p8), %s168_s6, 4294966784  ;;  %s781_s7 = sshll.u32 %s1026_s12, 1  ;;  %s1047_s17 = smov 127   ;;  %vm210_vm0 = vcmask 7168   ;;  %vm215_vm1 = vcmask 146568   ;;  %v1048_v6 = vmov 0.0  }
  0x40   : > { %p199_p9 = scmp.lt.s32.totalorder %s781_s7, 3  ;;  %212 = vst.msk [vmem:[#allocation2 + $0x9] sm:$0xff] %vm210_vm0, %v1048_v6  ;;  %211 = vst.msk [vmem:[#allocation2 + $0x1] sm:$0xff] %vm210_vm0, %v1048_v6  ;;  %s1049_s24 = smov 126   ;;  %vm205_vm2 = vcmask 139264   ;;  %v220_v7 = vld [vmem:[%s1201_s8] sm:$0xff] }
  0x41   : > { %213 = vst.msk [vmem:[#allocation2 + $0x19] sm:$0xff] %vm210_vm0, %v1048_v6  ;;  %214 = vst.msk [vmem:[#allocation2 + $0x21] sm:$0xff] %vm210_vm0, %v1048_v6  ;;  %v221_v8 = vld [vmem:[%s1201_s8 + $0x8] sm:$0xff]  ;;  %s1050_s22 = smov 1   ;;  %v222_v9 = vld [vmem:[%s1201_s8 + $0x10] sm:$0xff]  ;;  %vm240_vm3 = vcmask 138248  }
  0x42   : > { %s1461_s7 = smov (!%p199_p9, %s781_s7), 3  ;;  %217 = vst.msk [vmem:[#allocation2 + $0x9] sm:$0xff] %vm215_vm1, %v1048_v6  ;;  %216 = vst.msk [vmem:[#allocation2 + $0x1] sm:$0xff] %vm215_vm1, %v1048_v6  ;;  %v223_v10 = vld [vmem:[%s1201_s8 + $0x18] sm:$0xff]  ;;  %vm279_vm4 = vcmask 1046528   ;;  %vm306_vm5 = vcmask 1045504  }
  0x43   : > { %s782_s18 = sshll.u32 %s1461_s7, 2  ;;  %218 = vst.msk [vmem:[#allocation2 + $0x19] sm:$0xff] %vm215_vm1, %v1048_v6  ;;  %219 = vst.msk [vmem:[#allocation2 + $0x21] sm:$0xff] %vm215_vm1, %v1048_v6  ;;  %vm489_vm6 = vcmask 130048   ;;  %p1445_p12 = scmp.ne.s32.totalorder %s1442_s25, 0 }
  0x44   : > { %s202_s29 = scalar_lea.vmem %s1437_s1, %s782_s18  ;;  %206 = vst.msk [vmem:[#allocation2] sm:$0x1] %vm205_vm2, %v1048_v6  ;;  %207 = vst.msk [vmem:[#allocation2 + $0x18] sm:$0x1] %vm205_vm2, %v1048_v6 }
  0x45   : > { %v245_v0 = vld [vmem:[%s202_s29] sm:$0x7]  ;;  %v246_v1 = vld [vmem:[%s202_s29 + $0x4] sm:$0x7]  ;;  %208 = vst.msk [vmem:[#allocation2 + $0x11] sm:$0x1] %vm205_vm2, %v1048_v6 }
  0x46   : > { %317 = vrot.lane.b32.xlu0 %v245_v0, %s1047_s17  ;;  %v263_v2 = vrot.slane %v245_v0, 1  ;;  %792 = vpush %v245_v0  ;;  %v264_v3 = vrot.slane %v246_v1, 1  ;;  %v290_v4 = vrot.slane %v245_v0, 2  ;;  %v291_v5 = vrot.slane %v246_v1, 2 }
  0x47   : > { %794 = vpush %v246_v1 }
  0x48   : > { %339 = vrot.lane.b32.xlu1 %v263_v2, %s1047_s17  ;;  %796 = vpush %v263_v2 }
  0x49   : > { %798 = vpush %v264_v3 }
  0x4a   : > { %319 = vrot.lane.b32.xlu0 %v246_v1, %s1047_s17  ;;  %800 = vpush %v290_v4 }
  0x4b   : > { %802 = vpush %v291_v5 }
  0x4c   : > { %341 = vrot.lane.b32.xlu1 %v264_v3, %s1047_s17  ;;  %209 = vst.msk [vmem:[#allocation2 + $0x29] sm:$0x1] %vm205_vm2, %v1048_v6 }
  0x4e   : > { %371 = vrot.lane.b32.xlu0 %v290_v4, %s1047_s17 }
  0x50   : > { %373 = vrot.lane.b32.xlu1 %v291_v5, %s1047_s17 }
  0x52   : > { %403 = vrot.lane.b32.xlu0 %v245_v0, %s1049_s24 }
  0x54   : > { %405 = vrot.lane.b32.xlu1 %v246_v1, %s1049_s24 }
  0x56   : > { %425 = vrot.lane.b32.xlu0 %v263_v2, %s1049_s24 }
  0x58   : > { %427 = vrot.lane.b32.xlu1 %v264_v3, %s1049_s24 }
  0x5a   : > { %457 = vrot.lane.b32.xlu0 %v290_v4, %s1049_s24 }
  0x5c   : > { %459 = vrot.lane.b32.xlu1 %v291_v5, %s1049_s24 }
  0x5e   : > { %228 = vrot.lane.b32.xlu0 %v220_v7, %s1050_s22 }
  0x60   : > { %230 = vrot.lane.b32.xlu1 %v221_v8, %s1050_s22 }
  0x62   : > { %232 = vrot.lane.b32.xlu0 %v222_v9, %s1050_s22 }
  0x64   : > { %234 = vrot.lane.b32.xlu1 %v223_v10, %s1050_s22 }
  0x77   : > { %s1227_s26 = spop %792 }
  0x78   : > { %s1229_s3 = spop %794  ;;  %v253_v27 = vstv %s1227_s26 }
  0x79   : > { %s797_s23 = spop %796  ;;  %v257_v35 = vstv %s1229_s3 }
  0x7a   : > { %s799_s6 = spop %798  ;;  %v266_v28 = vstv %s797_s23 }
  0x7b   : > { %s801_s8 = spop %800  ;;  %v269_v38 = vstv %s799_s6 }
  0x7c   : > { %v293_v29 = vstv %s801_s8  ;;  %s803_s7 = spop %802 }
  0x7d   : > { %v296_v39 = vstv %s803_s7 }
  0xb8   : > { %v318_v11 = vpop.permute.xlu0 %317 }
  0xb9   : > { %804 = vpush %v318_v11 }
  0xba   : > { %v340_v12 = vpop.permute.xlu1 %339 }
  0xbc   : > { %v320_v13 = vpop.permute.xlu0 %319 }
  0xbd   : > { %806 = vpush %v320_v13 }
  0xbe   : > { %808 = vpush %v340_v12  ;;  %v342_v14 = vpop.permute.xlu1 %341 }
  0xbf   : > { %810 = vpush %v342_v14 }
  0xc0   : > { %v372_v15 = vpop.permute.xlu0 %371 }
  0xc1   : > { %812 = vpush %v372_v15 }
  0xc2   : > { %v374_v16 = vpop.permute.xlu1 %373 }
  0xc3   : > { %814 = vpush %v374_v16 }
  0xc4   : > { %v404_v17 = vpop.permute.xlu0 %403 }
  0xc5   : > { %816 = vpush %v404_v17 }
  0xc6   : > { %v406_v18 = vpop.permute.xlu1 %405 }
  0xc7   : > { %818 = vpush %v406_v18 }
  0xc8   : > { %v426_v19 = vpop.permute.xlu0 %425 }
  0xc9   : > { %820 = vpush %v426_v19 }
  0xca   : > { %v428_v20 = vpop.permute.xlu1 %427 }
  0xcb   : > { %822 = vpush %v428_v20 }
  0xcc   : > { %v458_v21 = vpop.permute.xlu0 %457 }
  0xcd   : > { %824 = vpush %v458_v21 }
  0xce   : > { %v460_v22 = vpop.permute.xlu1 %459 }
  0xcf   : > { %826 = vpush %v460_v22 }
  0xd0   : > { %v229_v23 = vpop.permute.xlu0 %228 }
  0xd1   : > { %241 = vst.msk [vmem:[#allocation2 + $0x1] sm:$0xff] %vm240_vm3, %v229_v23 }
  0xd2   : > { %v231_v24 = vpop.permute.xlu1 %230 }
  0xd3   : > { %242 = vst.msk [vmem:[#allocation2 + $0x9] sm:$0xff] %vm240_vm3, %v231_v24 }
  0xd4   : > { %v233_v25 = vpop.permute.xlu0 %232 }
  0xd5   : > { %243 = vst.msk [vmem:[#allocation2 + $0x19] sm:$0xff] %vm240_vm3, %v233_v25 }
  0xd6   : > { %v235_v26 = vpop.permute.xlu1 %234 }
  0xd7   : > { %244 = vst.msk [vmem:[#allocation2 + $0x21] sm:$0xff] %vm240_vm3, %v235_v26 }
  0xd8   : > { %v1232_v30 = vld [vmem:[#allocation2] sm:$0xff] }
  0xd9   : > { %v259_v31 = vmul.f32 %v253_v27, %v1232_v30  ;;  %v271_v32 = vmul.f32 %v266_v28, %v1232_v30  ;;  %v298_v33 = vmul.f32 %v293_v29, %v1232_v30 }
  0xda   : > { %v1237_v34 = vld [vmem:[#allocation2 + $0x8] sm:$0xff]  ;;  %v1242_v37 = vld [vmem:[#allocation2 + $0x10] sm:$0x3] }
  0xdb   : > { %v1240_v36 = vld [vmem:[#allocation2 + $0x8] sm:$0x3]  ;;  %v496_v40 = vmul.f32 %v1237_v34, %v253_v27  ;;  %v280_v42 = vrot.slane %v271_v32, 1  ;;  %v500_v43 = vmul.f32 %v1237_v34, %v266_v28  ;;  %v501_v45 = vmul.f32 %v1242_v37, %v266_v28 }
  0xdc   : > { %v272_v41 = vmul.f32 %v266_v28, %v1240_v36  ;;  %v1247_v44 = vld [vmem:[#allocation2 + $0x18] sm:$0xff]  ;;  %v299_v46 = vmul.f32 %v293_v29, %v1240_v36  ;;  %v307_v47 = vrot.slane %v298_v33, 2  ;;  %v518_v48 = vmul.f32 %v1237_v34, %v293_v29 }
  0xdd   : > { %v260_v49 = vmul.f32 %v257_v35, %v1247_v44  ;;  %v508_v51 = vrot.slane %v500_v43, 1  ;;  %v273_v52 = vmul.f32 %v269_v38, %v1247_v44  ;;  %v509_v54 = vrot.slane %v501_v45, 1 }
  0xde   : > { %v281_v50 = vrot.slane %v272_v41, 1  ;;  %v1254_v53 = vld [vmem:[#allocation2 + $0x20] sm:$0xff]  ;;  %v1258_v56 = vld [vmem:[#allocation2 + $0x28] sm:$0x3]  ;;  %v519_v57 = vmul.f32 %v1242_v37, %v293_v29  ;;  %v300_v58 = vmul.f32 %v296_v39, %v1247_v44  ;;  %v308_v0 = vrot.slane %v299_v46, 2 }
  0xdf   : > { %v1256_v55 = vld [vmem:[#allocation2 + $0x20] sm:$0x3]  ;;  %v497_v59 = vmul.f32 %v1254_v53, %v257_v35  ;;  %v283_v61 = vrot.slane %v273_v52, 1  ;;  %v502_v62 = vmul.f32 %v1254_v53, %v269_v38  ;;  %v503_v63 = vmul.f32 %v1258_v56, %v269_v38 }
  0xe0   : > { %v274_v60 = vmul.f32 %v269_v38, %v1256_v55  ;;  %v526_v1 = vrot.slane %v518_v48, 2  ;;  %v527_v2 = vrot.slane %v519_v57, 2  ;;  %v301_v5 = vmul.f32 %v296_v39, %v1256_v55 }
  0xe1   : > { %v511_v4 = vrot.slane %v502_v62, 1  ;;  %v310_v6 = vrot.slane %v300_v58, 2  ;;  %v512_v7 = vrot.slane %v503_v63, 1  ;;  %v520_v8 = vmul.f32 %v1254_v53, %v296_v39 }
  0xe2   : > { %v284_v3 = vrot.slane %v274_v60, 1  ;;  %v521_v9 = vmul.f32 %v1258_v56, %v296_v39  ;;  %v282_v10 = vsel %vm279_vm4, %v280_v42, %v281_v50  ;;  %v311_v11 = vrot.slane %v301_v5, 2 }
  0xe3   : > { %v288_v12 = vadd.f32 %v282_v10, %v259_v31  ;;  %v309_v13 = vsel %vm306_vm5, %v307_v47, %v308_v0  ;;  %v529_v15 = vrot.slane %v520_v8, 2  ;;  %v510_v18 = vsel %vm279_vm4, %v508_v51, %v509_v54 }
  0xe4   : > { %v285_v14 = vsel %vm279_vm4, %v283_v61, %v284_v3  ;;  %v530_v16 = vrot.slane %v521_v9, 2  ;;  %v312_v20 = vsel %vm306_vm5, %v310_v6, %v311_v11  ;;  %v516_v21 = vadd.f32 %v510_v18, %v496_v40 }
  0xe5   : > { %v289_v17 = vadd.f32 %v285_v14, %v260_v49  ;;  %v1273_v19 = vadd.f32 %v309_v13, %v288_v12  ;;  %v528_v22 = vsel %vm306_vm5, %v526_v1, %v527_v2  ;;  %v513_v24 = vsel %vm279_vm4, %v511_v4, %v512_v7 }
  0xe6   : > { %v531_v25 = vsel %vm306_vm5, %v529_v15, %v530_v16  ;;  %v1281_v26 = vadd.f32 %v528_v22, %v516_v21  ;;  %v517_v27 = vadd.f32 %v513_v24, %v497_v59 }
  0xe7   : > { %v1277_v23 = vadd.f32 %v312_v20, %v289_v17 }
  0xe8   : > { %v1283_v28 = vadd.f32 %v531_v25, %v517_v27 }
  0xea   : > { %s805_s18 = spop %804 }
  0xeb   : > { %v322_v29 = vstv %s805_s18 }
  0xec   : > { %v327_v31 = vmul.f32 %v322_v29, %v1232_v30  ;;  %v536_v33 = vmul.f32 %v1237_v34, %v322_v29 }
  0xee   : > { %s807_s21 = spop %806  ;;  %331 = vrot.lane.b32.xlu0 %v327_v31, %s1047_s17 }
  0xef   : > { %v325_v32 = vstv %s807_s21  ;;  %s809_s27 = spop %808 }
  0xf0   : > { %v328_v35 = vmul.f32 %v325_v32, %v1247_v44  ;;  %v537_v38 = vmul.f32 %v1254_v53, %v325_v32  ;;  %s811_s29 = spop %810  ;;  %v344_v39 = vstv %s809_s27  ;;  %s196_s27 = scalar_lea.vmem [#allocation6], %s779_s5 }
  0xf1   : > { %v347_v40 = vstv %s811_s29  ;;  %v349_v41 = vmul.f32 %v344_v39, %v1232_v30  ;;  %v350_v42 = vmul.f32 %v344_v39, %v1240_v36  ;;  %v548_v52 = vmul.f32 %v1237_v34, %v344_v39  ;;  %s667_s29 = sshll.u32 %s196_s27, 4  ;;  %s1373_s29 = int_to_ptr.vmem [resolvable:$true] %s667_s29 }
  0xf2   : > { %333 = vrot.lane.b32.xlu1 %v328_v35, %s1047_s17  ;;  %540 = vrot.lane.b32.xlu0 %v536_v33, %s1047_s17  ;;  %s813_s22 = spop %812  ;;  %v351_v48 = vmul.f32 %v347_v40, %v1247_v44  ;;  %v352_v49 = vmul.f32 %v347_v40, %v1256_v55  ;;  %v549_v54 = vmul.f32 %v1242_v37, %v344_v39 }
  0xf3   : > { %v357_v50 = vrot.slane %v349_v41, 1  ;;  %v358_v51 = vrot.slane %v350_v42, 1  ;;  %v550_v57 = vmul.f32 %v1254_v53, %v347_v40  ;;  %v551_v58 = vmul.f32 %v1258_v56, %v347_v40 }
  0xf4   : > { %s815_s26 = spop %814  ;;  %v360_v61 = vrot.slane %v351_v48, 1  ;;  %v361_v62 = vrot.slane %v352_v49, 1  ;;  %v376_v63 = vstv %s813_s22  ;;  %v556_v1 = vrot.slane %v548_v52, 1 }
  0xf5   : > { %v379_v0 = vstv %s815_s26  ;;  %v557_v2 = vrot.slane %v549_v54, 1  ;;  %v559_v3 = vrot.slane %v550_v57, 1  ;;  %v560_v4 = vrot.slane %v551_v58, 1  ;;  %s651_s26 = scalar_lea.sflag [#allocation5], %s1195_s4 }
  0xf6   : > { %542 = vrot.lane.b32.xlu1 %v537_v38, %s1047_s17  ;;  %s817_s3 = spop %816  ;;  %v381_v5 = vmul.f32 %v376_v63, %v1232_v30  ;;  %v359_v6 = vsel %vm279_vm4, %v357_v50, %v358_v51  ;;  %v382_v7 = vmul.f32 %v376_v63, %v1240_v36  ;;  %v383_v8 = vmul.f32 %v379_v0, %v1247_v44 }
  0xf7   : > { %v408_v43 = vstv %s817_s3  ;;  %v384_v9 = vmul.f32 %v379_v0, %v1256_v55  ;;  %v362_v10 = vsel %vm279_vm4, %v360_v61, %v361_v62  ;;  %v570_v11 = vmul.f32 %v1237_v34, %v376_v63  ;;  %s944_s3 = scalar_lea.vmem %s1373_s29, 512 }
  0xf8   : > { %s819_s23 = spop %818  ;;  %v413_v46 = vmul.f32 %v408_v43, %v1232_v30  ;;  %v592_v59 = vmul.f32 %v1237_v34, %v408_v43  ;;  %v571_v12 = vmul.f32 %v1242_v37, %v376_v63  ;;  %v558_v13 = vsel %vm279_vm4, %v556_v1, %v557_v2  ;;  %p945_p8 = scmp.ne.s32.totalorder %s1373_s29, %s944_s3 }
  0xf9   : > { %v411_v45 = vstv %s819_s23  ;;  %v389_v14 = vrot.slane %v381_v5, 2  ;;  %v572_v15 = vmul.f32 %v1254_v53, %v379_v0  ;;  %v573_v16 = vmul.f32 %v1258_v56, %v379_v0  ;;  %s1051_s23 = smov [#allocation6]  }
  0xfa   : > { %v414_v47 = vmul.f32 %v411_v45, %v1247_v44  ;;  %417 = vrot.lane.b32.xlu0 %v413_v46, %s1049_s24  ;;  %v593_v60 = vmul.f32 %v1254_v53, %v411_v45  ;;  %s821_s6 = spop %820  ;;  %v390_v18 = vrot.slane %v382_v7, 2  ;;  %v392_v20 = vrot.slane %v383_v8, 2  ;;  %p946_p0 = pnand %p945_p8, %p1445_p12 }
  0xfb   : > { %v430_v17 = vstv %s821_s6  ;;  %v393_v21 = vrot.slane %v384_v9, 2  ;;  %v561_v22 = vsel %vm279_vm4, %v559_v3, %v560_v4  ;;  %v578_v25 = vrot.slane %v570_v11, 2  ;;  %s948_s6 = sshll.u32 %s1051_s23, 4  ;;  %s949_s6 = int_to_ptr.vmem [resolvable:$false] %s948_s6 }
  0xfc   : > { %419 = vrot.lane.b32.xlu1 %v414_v47, %s1049_s24  ;;  %s823_s8 = spop %822  ;;  %v435_v27 = vmul.f32 %v430_v17, %v1232_v30  ;;  %v579_v29 = vrot.slane %v571_v12, 2  ;;  %v581_v31 = vrot.slane %v572_v15, 2  ;;  %v582_v32 = vrot.slane %v573_v16, 2  ;;  %p947_p11 = pneg %p946_p0 }
  0xfd   : > { %v433_v24 = vstv %s823_s8  ;;  %v436_v33 = vmul.f32 %v430_v17, %v1240_v36  ;;  %v391_v39 = vsel %vm306_vm5, %v389_v14, %v390_v18  ;;  %v394_v40 = vsel %vm306_vm5, %v392_v20, %v393_v21  ;;  %s950_s8 = scalar_lea.vmem %s949_s6, 1024  ;;  %p951_p13 = scmp.lt.s32.totalorder %s1373_s29, %s949_s6 }
  0xfe   : > { %596 = vrot.lane.b32.xlu0 %v592_v59, %s1049_s24  ;;  %v437_v35 = vmul.f32 %v433_v24, %v1247_v44  ;;  %v438_v38 = vmul.f32 %v433_v24, %v1256_v55  ;;  %s825_s7 = spop %824  ;;  %v443_v41 = vrot.slane %v435_v27, 1  ;;  %v604_v42 = vmul.f32 %v1237_v34, %v430_v17  ;;  %p952_p1 = scmp.lt.s32.totalorder %s950_s8, %s944_s3 }
  0xff   : > { %v605_v43 = vmul.f32 %v1242_v37, %v430_v17  ;;  %v444_v45 = vrot.slane %v436_v33, 1  ;;  %v606_v46 = vmul.f32 %v1254_v53, %v433_v24  ;;  %v607_v47 = vmul.f32 %v1258_v56, %v433_v24 }
 0x100   : > { %598 = vrot.lane.b32.xlu1 %v593_v60, %s1049_s24  ;;  %s827_s18 = spop %826  ;;  %v462_v48 = vstv %s825_s7  ;;  %v446_v49 = vrot.slane %v437_v35, 1  ;;  %v447_v50 = vrot.slane %v438_v38, 1  ;;  %v580_v51 = vsel %vm306_vm5, %v578_v25, %v579_v29  ;;  %p953_p3 = por %p952_p1, %p951_p13 }
 0x101   : > { %v583_v52 = vsel %vm306_vm5, %v581_v31, %v582_v32  ;;  %v465_v54 = vstv %s827_s18  ;;  %v612_v57 = vrot.slane %v604_v42, 1  ;;  %v613_v58 = vrot.slane %v605_v43, 1 }
 0x102   : > { %363 = vrot.lane.b32.xlu0 %v359_v6, %s1047_s17  ;;  %v615_v59 = vrot.slane %v606_v46, 1  ;;  %v616_v60 = vrot.slane %v607_v47, 1  ;;  %v467_v61 = vmul.f32 %v462_v48, %v1232_v30  ;;  %v468_v62 = vmul.f32 %v462_v48, %v1240_v36  ;;  %p954_p5 = pnand %p953_p3, %p947_p11 }
 0x103   : > { %v469_v63 = vmul.f32 %v465_v54, %v1247_v44  ;;  %v470_v0 = vmul.f32 %v465_v54, %v1256_v55  ;;  %v445_v1 = vsel %vm279_vm4, %v443_v41, %v444_v45  ;;  %v448_v2 = vsel %vm279_vm4, %v446_v49, %v447_v50 }
 0x104   : > { %365 = vrot.lane.b32.xlu1 %v362_v10, %s1047_s17  ;;  %v626_v3 = vmul.f32 %v1237_v34, %v462_v48  ;;  %v627_v4 = vmul.f32 %v1242_v37, %v462_v48  ;;  %v475_v5 = vrot.slane %v467_v61, 2  ;;  %v476_v30 = vrot.slane %v468_v62, 2 }
 0x105   : > { %v628_v36 = vmul.f32 %v1254_v53, %v465_v54  ;;  %v629_v44 = vmul.f32 %v1258_v56, %v465_v54  ;;  %v478_v6 = vrot.slane %v469_v63, 2  ;;  %v479_v55 = vrot.slane %v470_v0, 2 }
 0x106   : > { %562 = vrot.lane.b32.xlu0 %v558_v13, %s1047_s17  ;;  %v614_v7 = vsel %vm279_vm4, %v612_v57, %v613_v58  ;;  %v617_v8 = vsel %vm279_vm4, %v615_v59, %v616_v60  ;;  %v634_v9 = vrot.slane %v626_v3, 2  ;;  %v635_v34 = vrot.slane %v627_v4, 2 }
 0x107   : > { %v637_v10 = vrot.slane %v628_v36, 2  ;;  %v638_v37 = vrot.slane %v629_v44, 2  ;;  %v477_v11 = vsel %vm306_vm5, %v475_v5, %v476_v30  ;;  %v480_v53 = vsel %vm306_vm5, %v478_v6, %v479_v55 }
 0x108   : > { %564 = vrot.lane.b32.xlu1 %v561_v22, %s1047_s17  ;;  %v636_v56 = vsel %vm306_vm5, %v634_v9, %v635_v34 }
 0x109   : > { %v639_v12 = vsel %vm306_vm5, %v637_v10, %v638_v37 }
 0x10a   : > { %395 = vrot.lane.b32.xlu0 %v391_v39, %s1047_s17 }
 0x10c   : > { %397 = vrot.lane.b32.xlu1 %v394_v40, %s1047_s17 }
 0x10e   : > { %584 = vrot.lane.b32.xlu0 %v580_v51, %s1047_s17 }
 0x110   : > { %586 = vrot.lane.b32.xlu1 %v583_v52, %s1047_s17  ;;  %s791_s17 = sshll.u32 %s1026_s12, 2 }
 0x112   : > { %449 = vrot.lane.b32.xlu0 %v445_v1, %s1049_s24 }
 0x114   : > { %451 = vrot.lane.b32.xlu1 %v448_v2, %s1049_s24 }
 0x116   : > { %618 = vrot.lane.b32.xlu0 %v614_v7, %s1049_s24 }
 0x118   : > { %620 = vrot.lane.b32.xlu1 %v617_v8, %s1049_s24 }
 0x11a   : > { %481 = vrot.lane.b32.xlu0 %v477_v11, %s1049_s24 }
 0x11c   : > { %483 = vrot.lane.b32.xlu1 %v480_v53, %s1049_s24 }
 0x11e   : > { %640 = vrot.lane.b32.xlu0 %v636_v56, %s1049_s24 }
 0x120   : > { %642 = vrot.lane.b32.xlu1 %v639_v12, %s1049_s24  ;;  %s786_s24 = sshll.u32 %s1030_s13, 3 }
 0x121   : > { %s664_s21 = sadd.s32 %s791_s17, %s786_s24 }
 0x122   : > { %s787_s12 = sshll.u32 %s664_s21, 7 }
 0x123   : > { %s1380_s22 = scalar_lea.hbm %s1438_s2, %s787_s12 }
 0x160   : > { %v332_v13 = vpop.permute.xlu0 %331 }
 0x161   : > { %v337_v35 = vadd.f32 %v332_v13, %v1273_v19 }
 0x164   : > { %v334_v14 = vpop.permute.xlu1 %333  ;;  %v541_v15 = vpop.permute.xlu0 %540 }
 0x165   : > { %v338_v38 = vadd.f32 %v334_v14, %v1277_v23  ;;  %v546_v43 = vadd.f32 %v541_v15, %v1281_v26 }
 0x168   : > { %v543_v16 = vpop.permute.xlu1 %542 }
 0x169   : > { %v547_v45 = vadd.f32 %v543_v16, %v1283_v28 }
 0x16c   : > { %v418_v17 = vpop.permute.xlu0 %417 }
 0x16e   : > { %v420_v18 = vpop.permute.xlu1 %419 }
 0x170   : > { %v597_v20 = vpop.permute.xlu0 %596 }
 0x172   : > { %v599_v21 = vpop.permute.xlu1 %598 }
 0x174   : > { %v364_v22 = vpop.permute.xlu0 %363 }
 0x175   : > { %v369_v39 = vadd.f32 %v364_v22, %v337_v35 }
 0x176   : > { %v366_v24 = vpop.permute.xlu1 %365 }
 0x177   : > { %v370_v40 = vadd.f32 %v366_v24, %v338_v38 }
 0x178   : > { %v563_v25 = vpop.permute.xlu0 %562 }
 0x179   : > { %v568_v48 = vadd.f32 %v563_v25, %v546_v43 }
 0x17a   : > { %v565_v27 = vpop.permute.xlu1 %564 }
 0x17b   : > { %v569_v49 = vadd.f32 %v565_v27, %v547_v45 }
 0x17c   : > { %v396_v29 = vpop.permute.xlu0 %395 }
 0x17d   : > { %v401_v46 = vadd.f32 %v396_v29, %v369_v39 }
 0x17e   : > { %v398_v31 = vpop.permute.xlu1 %397 }
 0x17f   : > { %v402_v47 = vadd.f32 %v398_v31, %v370_v40  ;;  %v423_v23 = vadd.f32 %v418_v17, %v401_v46 }
 0x180   : > { %v585_v32 = vpop.permute.xlu0 %584 }
 0x181   : > { %v590_v19 = vadd.f32 %v585_v32, %v568_v48  ;;  %v424_v54 = vadd.f32 %v420_v18, %v402_v47 }
 0x182   : > { %v587_v33 = vpop.permute.xlu1 %586 }
 0x183   : > { %v591_v52 = vadd.f32 %v587_v33, %v569_v49  ;;  %v602_v59 = vadd.f32 %v597_v20, %v590_v19 }
 0x184   : > { %v450_v41 = vpop.permute.xlu0 %449 }
 0x185   : > { %v455_v57 = vadd.f32 %v450_v41, %v423_v23  ;;  %v603_v60 = vadd.f32 %v599_v21, %v591_v52 }
 0x186   : > { %v452_v42 = vpop.permute.xlu1 %451 }
 0x187   : > { %v456_v58 = vadd.f32 %v452_v42, %v424_v54 }
 0x188   : > { %v619_v50 = vpop.permute.xlu0 %618 }
 0x189   : > { %v624_v63 = vadd.f32 %v619_v50, %v602_v59 }
 0x18a   : > { %v621_v51 = vpop.permute.xlu1 %620 }
 0x18b   : > { %v625_v0 = vadd.f32 %v621_v51, %v603_v60 }
 0x18c   : > { %v482_v26 = vpop.permute.xlu0 %481 }
 0x18d   : > { %v487_v61 = vadd.f32 %v482_v26, %v455_v57 }
 0x18e   : > { %v484_v28 = vpop.permute.xlu1 %483 }
 0x18f   : > { %v488_v62 = vadd.f32 %v484_v28, %v456_v58  ;;  %490 = vst.msk [vmem:[%s196_s27] sm:$0xff] %vm489_vm6, %v487_v61 }
 0x190   : > { %v641_v1 = vpop.permute.xlu0 %640 }
 0x191   : > { %491 = vst.msk [vmem:[%s196_s27 + $0x10] sm:$0xff] %vm489_vm6, %v488_v62  ;;  %v646_v3 = vadd.f32 %v641_v1, %v624_v63 }
 0x192   : > { %v643_v2 = vpop.permute.xlu1 %642 }
 0x193   : > { %v647_v4 = vadd.f32 %v643_v2, %v625_v0  ;;  %648 = vst.msk [vmem:[%s196_s27 + $0x8] sm:$0xff] %vm489_vm6, %v646_v3 }
 0x195   : > { %649 = vst.msk [vmem:[%s196_s27 + $0x18] sm:$0xff] %vm489_vm6, %v647_v4 }
 0x196   : > { %957 = shalt.err (!%p954_p5)
}
 0x197   : > { %s958_s7 = scalar_lea.hbm %s1380_s22, 512  ;;  %s962_s24 = scalar_lea.hbm %s1438_s2, 2048 }
 0x198   : > { %p959_p6 = scmp.ne.s32.totalorder %s1380_s22, %s958_s7  ;;  %p963_p4 = scmp.lt.u32.totalorder %s1380_s22, %s1438_s2 }
 0x199   : > { %p964_p10 = scmp.lt.u32.totalorder %s962_s24, %s958_s7  ;;  %p966_p8 = scmp.lt.u32.totalorder %s958_s7, %s1380_s22 }
 0x19a   : > { %p960_p7 = pnand %p959_p6, %p1445_p12 }
 0x19b   : > { %p965_p9 = por %p964_p10, %p963_p4 }
 0x19c   : > { %p961_p2 = pneg %p960_p7 }
 0x19d   : > { %p967_p0 = por %p966_p8, %p965_p9 }
 0x19f   : > { %p968_p11 = pnand %p967_p0, %p961_p2 }
 0x1a1   : > { %971 = shalt.err (!%p968_p11)
}
 0x1a2   : > { %s1052_s12 = smov 128   ;;  %s1053_s13 = smov 8  }
 0x1a3   : > { %830 = dma.vmem_to_hbm [thread:$0]  (%p1445_p12), %s1373_s29, 512, %s1380_s22, %s651_s26, %s1052_s12, %s1052_s12, %s1053_s13  }
 0x1a4 PF: > { %p841_p13 = scmp.ge.s32.totalorder %s1042_s16, 2  ;;  %s682_s5 = sand.u32 1, %s1014_s9  }
 0x1a5   : > { %p1446_p1 = scmp.ne.s32.totalorder %s1443_s28, 0  ;;  %s683_s3 = scalar_lea.sflag [#allocation5], %s682_s5 }
 0x1a7   : > { %p837_p3 = pnand %p841_p13, %p1446_p1 }
 0x1a9   : > { %1009 = dma.done.wait (!%p837_p3), %s683_s3, 512  }
 0x1aa   : > { %1011 = vsyncadd (!%p837_p3), %s683_s3, 4294966784  ;;  %s18_s16 = sadd.s32 1, %s1042_s16   ;;  %s1447_s9 = smov %s1018_s10 }
 0x1ab   : > { %p15_p5 = scmp.ge.s32.totalorder %s18_s16, 6   ;;  %s1448_s10 = smov %s1022_s11 }
 0x1ac   : > { %s1449_s11 = smov %s1147_s30  ;;  %s1450_s12 = smov %s1034_s14 }
 0x1ad   : > { %s1451_s13 = smov %s1038_s15  ;;  %s1452_s14 = smov %s1455_s19 }
 0x1ae   : > { %s1453_s15 = smov %s1459_s20  ;;  %17 = sbr.rel (!%p15_p5) target bundleno = 7 (0x7), region = 76 }
 0x1b5   :  { %688 = vsyncpa [#allocation4], 1 }
 0x1b6   :  { %690 = vsyncpa [#allocation4 + $0x1], 1 }
 0x1b7   :  { %691 = vsyncpa [#allocation5], 1 }
 0x1b8   :  { %693 = vsyncpa [#allocation5 + $0x1], 1 }

</bundles_post_ra>
